<compile_context>
chip_gen: v7x
topology: tpu7x:2x2x1
jax: 0.10.0
libtpu: 0.0.40
codegen_flags: <defaults>
</compile_context>

<pallas_src>
import functools

import jax
import jax.numpy as jnp
from jax.experimental import pallas as pl
from jax.experimental.pallas import tpu as pltpu


def _round_up(x, m):
    return (x + m - 1) // m * m


def _sublane_multiple(dtype):
    return {4: 8, 2: 16, 1: 32}.get(jnp.dtype(dtype).itemsize, 8)


def _softmax_kl_div_kernel(pred_ref, tar_ref, out_ref, acc_ref,
                           *, n_rows, tn, bpc):
    """One (tn, C) row tile of chunk c / block k; accumulate into acc_ref."""
    c = pl.program_id(0)
    k = pl.program_id(1)

    @pl.when(k == 0)
    def _():
        acc_ref[...] = jnp.zeros_like(acc_ref)

    pred = pred_ref[...].astype(jnp.float32)     # (tn, C)
    tar = tar_ref[...].astype(jnp.float32)       # (tn, C)

    # --- target normalization: tar_sum == 0 -> 1e-6 (PyTorch module semantics)
    tar_sum = jnp.sum(tar, axis=-1, keepdims=True)                  # (tn, 1)
    tar_sum_c = jnp.where(tar_sum == 0.0, jnp.float32(1e-6), tar_sum)
    inv = pl.reciprocal(tar_sum_c, approx=True)        # EUP slot (~free)
    inv = inv * (2.0 - tar_sum_c * inv)                # one Newton step -> ~f32

    # --- log_softmax pieces: z = pred - rowmax, lse = log(sum exp z) ---------
    m = jnp.max(pred, axis=-1, keepdims=True)                       # XLU
    z = pred - m
    lse = jnp.log(jnp.sum(jnp.exp(z), axis=-1, keepdims=True))      # (tn, 1)

    # --- masked log(target): log(1) = 0 where target == 0 (PyTorch masking) --
    t_is_0 = tar == 0.0
    log_t = jnp.where(t_is_0, 0.0, jnp.log(jnp.where(t_is_0, 1.0, tar)))

    # per-row KL: neither y = tar/tar_sum nor log_softmax is materialized.
    # All-zero target rows (tar_sum == 0) contribute exactly 0.
    s_tw = jnp.sum(tar * (log_t - z), axis=-1, keepdims=True)       # (tn, 1)
    per_row = inv * (s_tw + (lse - jnp.log(tar_sum_c)) * tar_sum)   # (tn, 1)

    # --- ragged-last-block / beyond-end masking (replaces wrapper jnp.pad) ---
    # Garbage rows can produce NaN, but jnp.where's element select does not
    # propagate NaN from the unselected branch, and all reductions above are
    # strictly per-row, so valid rows are unaffected.
    rows_before = (c * bpc + k) * tn
    row_ids = jax.lax.broadcasted_iota(jnp.int32, (tn, 1), 0)
    valid = row_ids < (n_rows - rows_before)
    per_row = jnp.where(valid, per_row, 0.0)

    acc_ref[...] += jnp.sum(per_row)        # scalar broadcast into (1,8,128)

    @pl.when(k == bpc - 1)
    def _():
        out_ref[...] = acc_ref[...]         # per-chunk partial sum


def softmax_kl_div_loss(pred_score, target_score, *, block_rows=None,
                        n_chunks=2):
    """loss = sum_rows KL(target/target_sum || softmax(pred)) / N."""
    assert pred_score.shape == target_score.shape
    N, C = pred_score.shape

    sub = max(_sublane_multiple(pred_score.dtype),
              _sublane_multiple(target_score.dtype))

    # ---- row-tile size ------------------------------------------------------
    # Per-step working set ~= 2 inputs x 2 pipeline buffers (native dtype)
    # + ~7 f32 elementwise temporaries.  Keep it under ~32 MiB so the explicit
    # 48 MiB vmem limit below holds on every generation (incl. v7x's 64 MiB).
    if block_rows is None:
        budget = 32 * 1024 * 1024
        ip = jnp.dtype(pred_score.dtype).itemsize
        it = jnp.dtype(target_score.dtype).itemsize
        per_row_bytes = C * (2 * (ip + it) + 7 * 4)
        block_rows = max(sub, budget // per_row_bytes)
    tn = max(sub, _round_up(int(block_rows), sub))
    tn = min(tn, _round_up(N, sub))

    nblk = pl.cdiv(N, tn)                    # total row tiles (ragged last ok)
    n_chunks = max(1, min(int(n_chunks), nblk))
    bpc = pl.cdiv(nblk, n_chunks)            # blocks per chunk

    def in_map(c, k):
        # Clamp beyond-end block indices; their rows are masked in-kernel.
        return (jnp.minimum(c * bpc + k, nblk - 1), 0)

    kernel = functools.partial(_softmax_kl_div_kernel,
                               n_rows=N, tn=tn, bpc=bpc)

    partials = pl.pallas_call(
        kernel,
        out_shape=jax.ShapeDtypeStruct((n_chunks, 8, 128), jnp.float32),
        grid_spec=pltpu.PrefetchScalarGridSpec(
            num_scalar_prefetch=0,
            grid=(n_chunks, bpc),
            in_specs=[pl.BlockSpec((tn, C), in_map),
                      pl.BlockSpec((tn, C), in_map)],
            out_specs=pl.BlockSpec((1, 8, 128), lambda c, k: (c, 0, 0)),
            scratch_shapes=[pltpu.VMEM((1, 8, 128), jnp.float32)],
        ),
        compiler_params=pltpu.CompilerParams(
            # chunk axis -> both TCs on v7x; block axis reduces into scratch.
            dimension_semantics=("parallel", "arbitrary"),
            vmem_limit_bytes=48 * 1024 * 1024,
        ),
    )(pred_score, target_score)

    # Tiny final reduction + 1/N in plain JAX.
    return jnp.sum(partials[:, 0, 0]) / jnp.float32(N)


def _reference(pred, tar):
    # pure-JAX reference mirroring the PyTorch module
    pred = pred.astype(jnp.float32)
    tar = tar.astype(jnp.float32)
    tar_sum = jnp.sum(tar, axis=1, keepdims=True)
    tar_sum = jnp.where(tar_sum == 0.0, 1e-6, tar_sum)
    y = tar / tar_sum
    log_x = jax.nn.log_softmax(pred, axis=1)
    y_is_0 = y == 0.0
    log_y = jnp.where(y_is_0, 0.0, jnp.log(jnp.where(y_is_0, 1.0, y)))
    res = y * (log_y - log_x)
    per_row = jnp.sum(res, axis=1, keepdims=True)
    return jnp.sum(per_row) / per_row.shape[0]


if __name__ == "__main__":
    key = jax.random.PRNGKey(0)
    k1, k2, k3, k4, k5, k6 = jax.random.split(key, 6)

    # Case 1: tiny single-block shape (N=8, C=32), incl. an all-zero target row.
    N1, C1 = 8, 32
    pred1 = jax.random.normal(k1, (N1, C1), dtype=jnp.float32)
    tar1 = jnp.maximum(jax.random.normal(k2, (N1, C1), dtype=jnp.float32), 0.0)
    tar1 = tar1.at[3, :].set(0.0)          # tar_sum == 0 path
    loss1 = jax.block_until_ready(softmax_kl_div_loss(pred1, tar1))
    ref1 = _reference(pred1, tar1)
    assert jnp.allclose(loss1, ref1, rtol=1e-4, atol=1e-5), (loss1, ref1)

    # Case 2: multi-chunk, multi-block grid with a ragged (masked) last block
    # and a clamped beyond-end block (N=40, tn=16 -> 3 blocks over 2 chunks).
    N2, C2 = 40, 160
    pred2 = jax.random.normal(k3, (N2, C2), dtype=jnp.float32)
    tar2 = jnp.maximum(jax.random.normal(k4, (N2, C2), dtype=jnp.float32), 0.0)
    tar2 = tar2.at[7, :].set(0.0)          # all-zero row inside a real block
    loss2 = jax.block_until_ready(
        softmax_kl_div_loss(pred2, tar2, block_rows=16))
    ref2 = _reference(pred2, tar2)
    assert jnp.allclose(loss2, ref2, rtol=1e-4, atol=1e-5), (loss2, ref2)

    # Case 3: bf16 inputs passed through un-upcast (halved-HBM-traffic path,
    # sublane multiple 16), 2 chunks x 1 block each with a ragged block.
    N3, C3 = 24, 128
    pred3 = jax.random.normal(k5, (N3, C3), dtype=jnp.float32).astype(jnp.bfloat16)
    tar3 = jnp.maximum(jax.random.normal(k6, (N3, C3), dtype=jnp.float32),
                       0.0).astype(jnp.bfloat16)
    tar3 = tar3.at[5, :].set(0.0)
    loss3 = jax.block_until_ready(
        softmax_kl_div_loss(pred3, tar3, block_rows=16))
    ref3 = _reference(pred3, tar3)
    assert jnp.allclose(loss3, ref3, rtol=5e-3, atol=1e-4), (loss3, ref3)

    print("KERNEL_OK")
</pallas_src>

<mosaic_0001>
module attributes {stable_mosaic.version = 11 : i64} {
  func.func @_softmax_kl_div_kernel(%arg0: i32, %arg1: i32, %arg2: memref<8x32xf32, #tpu.memory_space<vmem>>, %arg3: memref<8x32xf32, #tpu.memory_space<vmem>>, %arg4: memref<1x8x128xf32, #tpu.memory_space<vmem>>, %arg5: memref<1x8x128xf32, #tpu.memory_space<vmem>>) attributes {dimension_semantics = [#tpu.dimension_semantics<parallel>, #tpu.dimension_semantics<arbitrary>], iteration_bounds = array<i64: 1, 1>, scalar_prefetch = 0 : i64, scratch_operands = 1 : i64, tpu.core_type = #tpu.core_type<tc>, window_params = [{transform_indices = @transform_0, window_bounds = array<i64: 8, 32>}, {transform_indices = @transform_1, window_bounds = array<i64: 8, 32>}, {transform_indices = @transform_2, window_bounds = array<i64: 1, 8, 128>}]} {
    %c0_i32 = arith.constant 0 : i32
    %0 = arith.cmpi eq, %arg1, %c0_i32 : i32
    %1 = arith.extui %0 : i1 to i32
    %c0_i32_0 = arith.constant 0 : i32
    %2 = arith.cmpi ne, %1, %c0_i32_0 : i32
    scf.if %2 {
      %cst_24 = arith.constant 0.000000e+00 : f32
      %60 = vector.broadcast %cst_24 : f32 to vector<1x8x128xf32>
      %c0_25 = arith.constant 0 : index
      %c0_26 = arith.constant 0 : index
      %c0_27 = arith.constant 0 : index
      %61 = vector.load %arg5[%c0_25, %c0_26, %c0_27] : memref<1x8x128xf32, #tpu.memory_space<vmem>>, vector<1x8x128xf32>
      tpu.vector_store %arg5[%c0_25, %c0_26, %c0_27], %60 {strides = array<i32>} : memref<1x8x128xf32, #tpu.memory_space<vmem>>, vector<1x8x128xf32>,
    } else {
    }
    %c0 = arith.constant 0 : index
    %c0_1 = arith.constant 0 : index
    %3 = vector.load %arg2[%c0, %c0_1] : memref<8x32xf32, #tpu.memory_space<vmem>>, vector<8x32xf32>
    %c0_2 = arith.constant 0 : index
    %c0_3 = arith.constant 0 : index
    %4 = vector.load %arg3[%c0_2, %c0_3] : memref<8x32xf32, #tpu.memory_space<vmem>>, vector<8x32xf32>
    %cst = arith.constant dense<0.000000e+00> : vector<8xf32>
    %5 = vector.multi_reduction <add>, %4, %cst [1] : vector<8x32xf32> to vector<8xf32>
    %6 = vector.shape_cast %5 : vector<8xf32> to vector<8x1xf32>
    %cst_4 = arith.constant 0.000000e+00 : f32
    %7 = vector.broadcast %cst_4 : f32 to vector<8x1xf32>
    %8 = arith.cmpf oeq, %6, %7 : vector<8x1xf32>
    %cst_5 = arith.constant 9.99999997E-7 : f32
    %9 = vector.broadcast %cst_5 : f32 to vector<8x1xf32>
    %10 = arith.select %8, %9, %6 : vector<8x1xi1>, vector<8x1xf32>
    %11 = tpu.reciprocal %10 {approx = true} : vector<8x1xf32> -> vector<8x1xf32>
    %12 = arith.mulf %10, %11 : vector<8x1xf32>
    %cst_6 = arith.constant 2.000000e+00 : f32
    %13 = vector.broadcast %cst_6 : f32 to vector<8x1xf32>
    %14 = arith.subf %13, %12 : vector<8x1xf32>
    %15 = arith.mulf %11, %14 : vector<8x1xf32>
    %cst_7 = arith.constant dense<0xFF800000> : vector<8xf32>
    %16 = vector.multi_reduction <maximumf>, %3, %cst_7 [1] : vector<8x32xf32> to vector<8xf32>
    %17 = vector.shape_cast %16 : vector<8xf32> to vector<8x1xf32>
    %18 = vector.broadcast %17 : vector<8x1xf32> to vector<8x32xf32>
    %19 = arith.subf %3, %18 : vector<8x32xf32>
    %20 = math.exp %19 : vector<8x32xf32>
    %cst_8 = arith.constant dense<0.000000e+00> : vector<8xf32>
    %21 = vector.multi_reduction <add>, %20, %cst_8 [1] : vector<8x32xf32> to vector<8xf32>
    %22 = vector.shape_cast %21 : vector<8xf32> to vector<8x1xf32>
    %23 = math.log %22 : vector<8x1xf32>
    %cst_9 = arith.constant 0.000000e+00 : f32
    %24 = vector.broadcast %cst_9 : f32 to vector<8x32xf32>
    %25 = arith.cmpf oeq, %4, %24 : vector<8x32xf32>
    %cst_10 = arith.constant 1.000000e+00 : f32
    %26 = vector.broadcast %cst_10 : f32 to vector<8x32xf32>
    %27 = arith.select %25, %26, %4 : vector<8x32xi1>, vector<8x32xf32>
    %28 = math.log %27 : vector<8x32xf32>
    %cst_11 = arith.constant 0.000000e+00 : f32
    %29 = vector.broadcast %cst_11 : f32 to vector<8x32xf32>
    %30 = arith.select %25, %29, %28 : vector<8x32xi1>, vector<8x32xf32>
    %31 = arith.subf %30, %19 : vector<8x32xf32>
    %32 = arith.mulf %4, %31 : vector<8x32xf32>
    %cst_12 = arith.constant dense<0.000000e+00> : vector<8xf32>
    %33 = vector.multi_reduction <add>, %32, %cst_12 [1] : vector<8x32xf32> to vector<8xf32>
    %34 = vector.shape_cast %33 : vector<8xf32> to vector<8x1xf32>
    %35 = math.log %10 : vector<8x1xf32>
    %36 = arith.subf %23, %35 : vector<8x1xf32>
    %37 = arith.mulf %36, %6 : vector<8x1xf32>
    %38 = arith.addf %34, %37 : vector<8x1xf32>
    %39 = arith.mulf %15, %38 : vector<8x1xf32>
    %c1_i32 = arith.constant 1 : i32
    %40 = arith.muli %arg0, %c1_i32 : i32
    %41 = arith.addi %40, %arg1 : i32
    %c8_i32 = arith.constant 8 : i32
    %42 = arith.muli %41, %c8_i32 : i32
    %43 = tpu.iota {dimensions = array<i32: 0>} : vector<8x1xi32>
    %c8_i32_13 = arith.constant 8 : i32
    %44 = arith.subi %c8_i32_13, %42 : i32
    %45 = vector.broadcast %44 : i32 to vector<8x1xi32>
    %46 = arith.cmpi slt, %43, %45 : vector<8x1xi32>
    %cst_14 = arith.constant 0.000000e+00 : f32
    %47 = vector.broadcast %cst_14 : f32 to vector<8x1xf32>
    %48 = arith.select %46, %39, %47 : vector<8x1xi1>, vector<8x1xf32>
    %c0_15 = arith.constant 0 : index
    %c0_16 = arith.constant 0 : index
    %c0_17 = arith.constant 0 : index
    %49 = vector.load %arg5[%c0_15, %c0_16, %c0_17] : memref<1x8x128xf32, #tpu.memory_space<vmem>>, vector<1x8x128xf32>
    %50 = vector.shape_cast %48 : vector<8x1xf32> to vector<1x8x1xf32>
    %cst_18 = arith.constant dense<0.000000e+00> : vector<1xf32>
    %51 = vector.multi_reduction <add>, %50, %cst_18 [1, 2] : vector<1x8x1xf32> to vector<1xf32>
    %52 = vector.shape_cast %51 : vector<1xf32> to vector<1x1x1xf32>
    %53 = vector.extract %52[0, 0, 0] : f32 from vector<1x1x1xf32>
    %54 = vector.broadcast %53 : f32 to vector<1x8x128xf32>
    %55 = arith.addf %49, %54 : vector<1x8x128xf32>
    %c0_19 = arith.constant 0 : index
    %c0_20 = arith.constant 0 : index
    %c0_21 = arith.constant 0 : index
    %56 = vector.load %arg5[%c0_19, %c0_20, %c0_21] : memref<1x8x128xf32, #tpu.memory_space<vmem>>, vector<1x8x128xf32>
    tpu.vector_store %arg5[%c0_19, %c0_20, %c0_21], %55 {strides = array<i32>} : memref<1x8x128xf32, #tpu.memory_space<vmem>>, vector<1x8x128xf32>,
    %c0_i32_22 = arith.constant 0 : i32
    %57 = arith.cmpi eq, %arg1, %c0_i32_22 : i32
    %58 = arith.extui %57 : i1 to i32
    %c0_i32_23 = arith.constant 0 : i32
    %59 = arith.cmpi ne, %58, %c0_i32_23 : i32
    scf.if %59 {
      %c0_24 = arith.constant 0 : index
      %c0_25 = arith.constant 0 : index
      %c0_26 = arith.constant 0 : index
      %60 = vector.load %arg5[%c0_24, %c0_25, %c0_26] : memref<1x8x128xf32, #tpu.memory_space<vmem>>, vector<1x8x128xf32>
      %c0_27 = arith.constant 0 : index
      %c0_28 = arith.constant 0 : index
      %c0_29 = arith.constant 0 : index
      %61 = vector.load %arg4[%c0_27, %c0_28, %c0_29] : memref<1x8x128xf32, #tpu.memory_space<vmem>>, vector<1x8x128xf32>
      tpu.vector_store %arg4[%c0_27, %c0_28, %c0_29], %60 {strides = array<i32>} : memref<1x8x128xf32, #tpu.memory_space<vmem>>, vector<1x8x128xf32>,
    } else {
    }
    return
  }
  func.func @transform_0(%arg0: i32, %arg1: i32) -> (i32, i32) {
    %c1_i32 = arith.constant 1 : i32
    %0 = arith.muli %arg0, %c1_i32 : i32
    %1 = arith.addi %0, %arg1 : i32
    %c0_i32 = arith.constant 0 : i32
    %2 = arith.minsi %1, %c0_i32 : i32
    %c0_i32_0 = arith.constant 0 : i32
    %c0_i32_1 = arith.constant 0 : i32
    return %2, %c0_i32_0 : i32, i32
  }
  func.func @transform_1(%arg0: i32, %arg1: i32) -> (i32, i32) {
    %c1_i32 = arith.constant 1 : i32
    %0 = arith.muli %arg0, %c1_i32 : i32
    %1 = arith.addi %0, %arg1 : i32
    %c0_i32 = arith.constant 0 : i32
    %2 = arith.minsi %1, %c0_i32 : i32
    %c0_i32_0 = arith.constant 0 : i32
    %c0_i32_1 = arith.constant 0 : i32
    return %2, %c0_i32_0 : i32, i32
  }
  func.func @transform_2(%arg0: i32, %arg1: i32) -> (i32, i32, i32) {
    %c0_i32 = arith.constant 0 : i32
    %c0_i32_0 = arith.constant 0 : i32
    %c0_i32_1 = arith.constant 0 : i32
    return %arg0, %c0_i32, %c0_i32_0 : i32, i32, i32
  }
}

</mosaic_0001>

<bundles_post_ra>
// kernel: tpu_custom_call.1
= control target key start
LH: loop header
LB: loop body
LE: loop exit
PB: predicated region body
PF: predicated region fallthrough
CT: control target
= control target key end

     0   :  { %7 = vsyncpa [#allocation4], 0  ;;  %s289_s0 = inlined_call_operand.hbm [shape: f32[8,32], index: 0, kind: input, shape index: {}]   ;;  %s290_s1 = inlined_call_operand.hbm [shape: f32[8,32], index: 1, kind: input, shape index: {}]   ;;  %s291_s2 = inlined_call_operand.hbm [shape: f32[1,8,128], index: 2, kind: output, shape index: {}]  }
   0x1   :  { %8 = vsyncpa [#allocation7], 0 }
   0x2   :  { %9 = vsyncpa [#allocation5], 0  ;;  %s231_s9 = smov [#allocation3]   ;;  %s232_s11 = smov [#allocation6]  }
   0x3   :  { %s21_s10 = sshll.u32 %s231_s9, 4  ;;  %s36_s12 = sshll.u32 %s232_s11, 4  ;;  %s22_s10 = int_to_ptr.vmem [resolvable:$true] %s21_s10  ;;  %s37_s12 = int_to_ptr.vmem [resolvable:$true] %s36_s12 }
   0x4   :  { %s159_s15 = scalar_lea.hbm %s289_s0, 128 }
   0x5   :  { %p160_p0 = scmp.ne.s32.totalorder %s289_s0, %s159_s15  ;;  %p163_p1 = scmp.lt.u32.totalorder %s159_s15, %s289_s0 }
   0x7   :  { %p165_p2 = pnand %p163_p1, %p160_p0 }
   0x9   :  { %168 = shalt.err (!%p165_p2)
}
   0xa   :  { %s169_s20 = scalar_lea.vmem %s22_s10, 128  ;;  %p174_p4 = scmp.lt.s32.totalorder %s22_s10, %s22_s10 }
   0xb   :  { %p170_p3 = scmp.ne.s32.totalorder %s22_s10, %s169_s20  ;;  %p175_p5 = scmp.lt.s32.totalorder %s169_s20, %s169_s20 }
   0xd   :  { %p176_p6 = por %p175_p5, %p174_p4 }
   0xf   :  { %p177_p7 = pnand %p176_p6, %p170_p3 }
  0x11   :  { %180 = shalt.err (!%p177_p7)
}
  0x12   :  { %24 = dma.hbm_to_vmem [thread:$0]  %s289_s0, 128, %s22_s10, [#allocation4]  }
  0x13   :  { %s181_s25 = scalar_lea.hbm %s290_s1, 128 }
  0x14   :  { %p182_p8 = scmp.ne.s32.totalorder %s290_s1, %s181_s25  ;;  %p185_p9 = scmp.lt.u32.totalorder %s181_s25, %s290_s1 }
  0x16   :  { %p187_p10 = pnand %p185_p9, %p182_p8 }
  0x18   :  { %190 = shalt.err (!%p187_p10)
}
  0x19   :  { %s191_s30 = scalar_lea.vmem %s37_s12, 128  ;;  %p196_p12 = scmp.lt.s32.totalorder %s37_s12, %s37_s12 }
  0x1a   :  { %p192_p11 = scmp.ne.s32.totalorder %s37_s12, %s191_s30  ;;  %p197_p13 = scmp.lt.s32.totalorder %s191_s30, %s191_s30 }
  0x1c   :  { %p198_p0 = por %p197_p13, %p196_p12 }
  0x1e   :  { %p199_p1 = pnand %p198_p0, %p192_p11 }
  0x20   :  { %202 = shalt.err (!%p199_p1)
}
  0x21   :  { %39 = dma.hbm_to_vmem [thread:$0]  %s290_s1, 128, %s37_s12, [#allocation7]  }
  0x22   :  { %225 = dma.done.wait [#allocation4], 128  }
  0x23   :  { %226 = vsyncadd [#allocation4], 4294967168 }
  0x24   :  { %227 = dma.done.wait [#allocation7], 128  }
  0x25   :  { %228 = vsyncadd [#allocation7], 4294967168  ;;  %vm59_vm0 = vcmask 261120   ;;  %v57_v0 = vld [vmem:[#allocation3] sm:$0xff]  ;;  %v58_v2 = vld [vmem:[#allocation6] sm:$0xff]  ;;  %vm105_vm3 = vcmask 7168  }
  0x26   :  { %v69_v1 = vsel %vm59_vm0, %v57_v0, -inf  ;;  %v60_v3 = vsel %vm59_vm0, %v58_v2, 0.0  ;;  %vm80_vm1 = vcmp.eq.f32.partialorder %v58_v2, 0.0  ;;  %s233_s1 = smov [#allocation8]  }
  0x27   :  { %70 = vmax.xlane.f32.xlu0 %v69_v1  ;;  %v81_v4 = vsel %vm80_vm1, 1.0, %v58_v2  ;;  %s130_s4 = sshll.u32 %s233_s1, 4  ;;  %s131_s4 = int_to_ptr.vmem [resolvable:$true] %s130_s4 }
  0x28   :  { %149 = vlog2.f32 %v81_v4  ;;  %s203_s6 = scalar_lea.vmem %s131_s4, 128  ;;  %p208_p3 = scmp.lt.s32.totalorder %s131_s4, %s131_s4 }
  0x29   :  { %p204_p2 = scmp.ne.s32.totalorder %s131_s4, %s203_s6  ;;  %p209_p4 = scmp.lt.s32.totalorder %s203_s6, %s203_s6 }
  0x2b   :  { %61 = vadd.xlane.f32.xlu0 %v60_v3  ;;  %p210_p5 = por %p209_p4, %p208_p3 }
  0x2d   :  { %p211_p6 = pnand %p210_p5, %p204_p2 }
  0x32   :  { %v150_v7 = vpop.eup %149 }
  0x33   :  { %v83_v9 = vmul.f32 0.6931472, %v150_v7 }
  0x35   :  { %v84_v10 = vsel %vm80_vm1, 0.0, %v83_v9 }
  0xb4   :  { %v71_v5 = vpop.xlane.xlu0 %70 }
  0xb5   :  { %v72_v6 = vsub.f32 %v57_v0, %v71_v5 }
  0xb7   :  { %v73_v8 = vmul.f32 1.442695, %v72_v6  ;;  %v85_v11 = vsub.f32 %v84_v10, %v72_v6 }
  0xb8   :  { %v62_v16 = vpop.xlane.xlu0 %61 }
  0xb9   :  { %151 = vpow2.f32 %v73_v8  ;;  %v86_v14 = vmul.f32 %v85_v11, %v58_v2  ;;  %vm63_vm2 = vcmp.eq.f32.partialorder %v62_v16, 0.0 }
  0xba   :  { %v64_v17 = vsel %vm63_vm2, 1e-06, %v62_v16 }
  0xbb   :  { %v87_v15 = vsel %vm59_vm0, %v86_v14, 0.0  ;;  %153 = vrcp.f32 %v64_v17 }
  0xbc   :  { %155 = vlog2.f32 %v64_v17 }
  0xc3   :  { %v152_v12 = vpop.eup %151 }
  0xc4   :  { %v75_v13 = vsel %vm59_vm0, %v152_v12, 0.0 }
  0xc5   :  { %76 = vadd.xlane.f32.xlu1 %v75_v13  ;;  %v154_v19 = vpop.eup %153 }
  0xc6   :  { %v156_v20 = vpop.eup %155  ;;  %v66_v21 = vmul.f32 %v154_v19, %v64_v17 }
  0xc7   :  { %v91_v22 = vmul.f32 0.6931472, %v156_v20 }
  0xc8   :  { %v67_v25 = vsub.f32 2.0, %v66_v21 }
  0xc9   :  { %88 = vadd.xlane.f32.xlu1 %v87_v15 }
  0xca   :  { %v68_v30 = vmul.f32 %v154_v19, %v67_v25 }
 0x152   :  { %v77_v18 = vpop.xlane.xlu1 %76 }
 0x153   :  { %157 = vlog2.f32 %v77_v18 }
 0x156   :  { %v89_v28 = vpop.xlane.xlu1 %88 }
 0x15d   :  { %v158_v23 = vpop.eup %157 }
 0x15e   :  { %v79_v24 = vmul.f32 0.6931472, %v158_v23 }
 0x160   :  { %v92_v26 = vsub.f32 %v79_v24, %v91_v22 }
 0x162   :  { %v93_v27 = vmul.f32 %v92_v26, %v62_v16 }
 0x164   :  { %v94_v29 = vadd.f32 %v93_v27, %v89_v28 }
 0x166   :  { %v95_v31 = vmul.f32 %v94_v29, %v68_v30 }
 0x168   :  { %v106_v32 = vsel %vm105_vm3, %v95_v31, 0.0 }
 0x169   :  { %107 = vadd.xlane.f32.xlu0 %v106_v32 }
 0x1f6   :  { %v108_v33 = vpop.xlane.xlu0 %107 }
 0x1f7   :  { %v109_v34 = vrot.slane %v108_v33, 4 }
 0x1f9   :  { %v110_v35 = vadd.f32 %v109_v34, %v108_v33 }
 0x1fb   :  { %v111_v36 = vrot.slane %v110_v35, 2 }
 0x1fd   :  { %v112_v37 = vadd.f32 %v111_v36, %v110_v35 }
 0x1ff   :  { %v113_v38 = vrot.slane %v112_v37, 1 }
 0x201   :  { %v114_v39 = vadd.f32 %v113_v38, %v112_v37 }
 0x203   :  { %144 = vpush %v114_v39 }
 0x234   :  { %s145_s5 = spop %144 }
 0x235   :  { %v116_v40 = vstv %s145_s5 }
 0x236   :  { %123 = vst [vmem:[#allocation8] sm:$0xff] %v116_v40 }
 0x237   :  { %214 = shalt.err (!%p211_p6)
}
 0x238   :  { %s215_s9 = scalar_lea.hbm %s291_s2, 128 }
 0x239   :  { %p216_p7 = scmp.ne.s32.totalorder %s291_s2, %s215_s9  ;;  %p219_p8 = scmp.lt.u32.totalorder %s215_s9, %s291_s2 }
 0x23b   :  { %p221_p9 = pnand %p219_p8, %p216_p7 }
 0x23d   :  { %224 = shalt.err (!%p221_p9)
}
 0x23e   :  { %133 = dma.vmem_to_hbm [thread:$0]  %s131_s4, 128, %s291_s2, [#allocation5]  }
 0x23f   :  { %229 = dma.done.wait [#allocation5], 128  }
 0x240   :  { %230 = vsyncadd [#allocation5], 4294967168 }
 0x241   :  { %137 = vsyncpa [#allocation4], 1 }
 0x242   :  { %138 = vsyncpa [#allocation7], 1 }
 0x243   :  { %139 = vsyncpa [#allocation5], 1 }

</bundles_post_ra>
